<compile_context>
chip_gen: v7x
topology: tpu7x:2x2x1
jax: 0.10.0
libtpu: 0.0.40
codegen_flags: <defaults>
</compile_context>

<pallas_src>
import functools

import jax
import jax.numpy as jnp
from jax.experimental import pallas as pl
from jax.experimental.pallas import tpu as pltpu


def _round_up(x, m):
    return (x + m - 1) // m * m


def _attention_kernel(feat_ref, hid_ref,
                      uw_ref, ub_ref, ww_ref, wb_ref, aw_ref, ab_ref,
                      alpha_ref, ctx_ref, *, seq_len):
    Bt, Lp, E = feat_ref.shape
    A = uw_ref.shape[1]

    feat = feat_ref[...]                                   # (Bt, Lp, E)
    hid = hid_ref[...]                                     # (Bt, D)

    # U projection on the MXU.  Lp is padded to a multiple of 8 (sublanes), so
    # collapsing (Bt, Lp, E) -> (Bt*Lp, E) is a layout no-op (no VMEM relayout).
    u_hs = jnp.dot(feat.reshape(Bt * Lp, E), uw_ref[...],
                   preferred_element_type=jnp.float32).reshape(Bt, Lp, A)
    u_hs = u_hs + ub_ref[...]                              # (Bt, Lp, A) + (1, A)

    # W projection of the decoder hidden state.
    w_ah = jnp.dot(hid, ww_ref[...],
                   preferred_element_type=jnp.float32) + wb_ref[...]   # (Bt, A)

    combined = jnp.tanh(u_hs + w_ah[:, None, :])           # (Bt, Lp, A)

    # Score head: PyTorch's A(.) is an (A -> 1) linear.  Instead of an N=1 MXU
    # matmul (1/128-1/256 of the MXU width + masked stores) do a VPU multiply
    # and a lane reduction; the A bias is a scalar read from SMEM.
    scores = jnp.sum(combined * aw_ref[...], axis=-1) + ab_ref[0]       # (Bt, Lp)

    # Mask padded sequence positions before the softmax.
    if Lp != seq_len:
        pos = jax.lax.broadcasted_iota(jnp.int32, (Bt, Lp), 1)
        scores = jnp.where(pos < seq_len, scores, jnp.float32(-1e30))

    # Numerically stable softmax over the sequence axis (dim=1).
    m = jnp.max(scores, axis=1, keepdims=True)
    e = jnp.exp(scores - m)
    alpha = e * pl.reciprocal(jnp.sum(e, axis=1, keepdims=True), approx=False)
    alpha_ref[...] = alpha.astype(alpha_ref.dtype)

    # Context vector; padded alpha columns are exactly zero so they add nothing.
    # TODO(synk): for large L (>=128) route this through the MXU as a
    # contraction over L instead of a broadcast-multiply + sublane reduce.
    ctx = jnp.sum(feat * alpha[:, :, None], axis=1)        # (Bt, E)
    ctx_ref[...] = ctx.astype(ctx_ref.dtype)


def attention_forward(features, hidden_state, params, *, batch_tile=None):
    """features: [B, L, E] f32, hidden_state: [B, D] f32.
    params: dict with PyTorch-layout weights (out, in) and biases.
    Returns (alpha [B, L], context [B, E])."""
    B, L, E = features.shape
    D = hidden_state.shape[1]
    A = params["U_w"].shape[0]

    # ---- sequence padding (sublane multiple) ------------------------------
    Lp = _round_up(L, 8)
    feat_p = features if Lp == L else jnp.pad(
        features, ((0, 0), (0, Lp - L), (0, 0)))

    # ---- batch tiling ------------------------------------------------------
    # Whole batch for tiny B; otherwise multiples of 8 so the grid pipeline can
    # double-buffer feature tiles and the parallel axis can be split over TCs.
    if batch_tile is None:
        Bt = B if B <= 8 else 8
    else:
        Bt = batch_tile
    Bp = _round_up(B, Bt)
    if Bp != B:
        feat_p = jnp.pad(feat_p, ((0, Bp - B), (0, 0), (0, 0)))
        hid_p = jnp.pad(hidden_state, ((0, Bp - B), (0, 0)))
    else:
        hid_p = hidden_state
    n_blocks = Bp // Bt

    # Transpose nn.Linear weights (out, in) -> (in, out) so the kernel does x @ W.
    uw = params["U_w"].T.astype(jnp.float32)                # (E, A)
    ub = params["U_b"].reshape(1, A).astype(jnp.float32)    # (1, A)
    ww = params["W_w"].T.astype(jnp.float32)                # (D, A)
    wb = params["W_b"].reshape(1, A).astype(jnp.float32)    # (1, A)
    aw = params["A_w"].reshape(1, A).astype(jnp.float32)    # (1, A) row for VPU reduce
    ab = params["A_b"].reshape(1).astype(jnp.float32)       # scalar -> SMEM

    const2d = lambda i: (0, 0)

    flops = (2 * Bp * Lp * E * A + 2 * Bp * D * A
             + 2 * Bp * Lp * A + 2 * Bp * Lp * E)
    transcendentals = Bp * Lp * A + Bp * Lp
    bytes_accessed = 4 * (Bp * Lp * E + Bp * D + E * A + D * A + 2 * A + 1
                          + Bp * Lp + Bp * E)

    alpha_p, ctx_p = pl.pallas_call(
        functools.partial(_attention_kernel, seq_len=L),
        grid=(n_blocks,),
        in_specs=[
            pl.BlockSpec((Bt, Lp, E), lambda i: (i, 0, 0)),     # features tile
            pl.BlockSpec((Bt, D), lambda i: (i, 0)),            # hidden tile
            pl.BlockSpec((E, A), const2d),                      # U weight (resident)
            pl.BlockSpec((1, A), const2d),                      # U bias
            pl.BlockSpec((D, A), const2d),                      # W weight
            pl.BlockSpec((1, A), const2d),                      # W bias
            pl.BlockSpec((1, A), const2d),                      # A weight (row)
            pl.BlockSpec(memory_space=pltpu.MemorySpace.SMEM),  # A bias (scalar)
        ],
        out_specs=(
            pl.BlockSpec((Bt, Lp), lambda i: (i, 0)),           # alpha
            pl.BlockSpec((Bt, E), lambda i: (i, 0)),            # context
        ),
        out_shape=(jax.ShapeDtypeStruct((Bp, Lp), jnp.float32),
                   jax.ShapeDtypeStruct((Bp, E), jnp.float32)),
        compiler_params=pltpu.CompilerParams(
            dimension_semantics=("parallel",),
            vmem_limit_bytes=48 * 1024 * 1024,
        ),
        cost_estimate=pl.CostEstimate(
            flops=flops,
            transcendentals=transcendentals,
            bytes_accessed=bytes_accessed),
    )(feat_p, hid_p, uw, ub, ww, wb, aw, ab)

    return alpha_p[:B, :L], ctx_p[:B]


def _init_params(key, encoder_dim, decoder_dim, attention_dim):
    ks = jax.random.split(key, 6)
    scale = 0.1
    return {
        "W_w": scale * jax.random.normal(ks[0], (attention_dim, decoder_dim), jnp.float32),
        "W_b": scale * jax.random.normal(ks[1], (attention_dim,), jnp.float32),
        "U_w": scale * jax.random.normal(ks[2], (attention_dim, encoder_dim), jnp.float32),
        "U_b": scale * jax.random.normal(ks[3], (attention_dim,), jnp.float32),
        "A_w": scale * jax.random.normal(ks[4], (1, attention_dim), jnp.float32),
        "A_b": scale * jax.random.normal(ks[5], (1,), jnp.float32),
    }


def _reference(features, hidden_state, p):
    u_hs = features @ p["U_w"].T + p["U_b"]
    w_ah = hidden_state @ p["W_w"].T + p["W_b"]
    combined = jnp.tanh(u_hs + w_ah[:, None, :])
    scores = (combined @ p["A_w"].T + p["A_b"])[..., 0]
    alpha = jax.nn.softmax(scores, axis=1)
    ctx = jnp.sum(features * alpha[:, :, None], axis=1)
    return alpha, ctx


if __name__ == "__main__":
    key = jax.random.PRNGKey(0)

    # Case 1: toy shapes from the spec (single grid step, no padding needed).
    B, L, E, D, A = 2, 8, 32, 32, 32
    k1, k2, k3, key = jax.random.split(key, 4)
    feats = jax.random.normal(k1, (B, L, E), jnp.float32)
    hid = jax.random.normal(k2, (B, D), jnp.float32)
    params = _init_params(k3, E, D, A)

    alpha, ctx = attention_forward(feats, hid, params)
    jax.block_until_ready((alpha, ctx))
    ra, rc = _reference(feats, hid, params)
    assert alpha.shape == (B, L) and ctx.shape == (B, E)
    assert jnp.allclose(alpha, ra, atol=1e-5, rtol=1e-5)
    assert jnp.allclose(ctx, rc, atol=1e-5, rtol=1e-5)

    # Case 2: multi-block batch grid + padded/masked sequence length.
    B2, L2, E2, D2, A2 = 16, 12, 64, 32, 32
    k1, k2, k3, key = jax.random.split(key, 4)
    feats2 = jax.random.normal(k1, (B2, L2, E2), jnp.float32)
    hid2 = jax.random.normal(k2, (B2, D2), jnp.float32)
    params2 = _init_params(k3, E2, D2, A2)

    alpha2, ctx2 = attention_forward(feats2, hid2, params2)
    jax.block_until_ready((alpha2, ctx2))
    ra2, rc2 = _reference(feats2, hid2, params2)
    assert alpha2.shape == (B2, L2) and ctx2.shape == (B2, E2)
    assert jnp.allclose(alpha2, ra2, atol=1e-5, rtol=1e-5)
    assert jnp.allclose(ctx2, rc2, atol=1e-5, rtol=1e-5)

    print("KERNEL_OK")
</pallas_src>

<mosaic_0001>
module attributes {stable_mosaic.version = 11 : i64} {
  func.func @_attention_kernel(%arg0: i32, %arg1: memref<2x8x32xf32, #tpu.memory_space<vmem>>, %arg2: memref<2x32xf32, #tpu.memory_space<vmem>>, %arg3: memref<32x32xf32, #tpu.memory_space<vmem>>, %arg4: memref<1x32xf32, #tpu.memory_space<vmem>>, %arg5: memref<32x32xf32, #tpu.memory_space<vmem>>, %arg6: memref<1x32xf32, #tpu.memory_space<vmem>>, %arg7: memref<1x32xf32, #tpu.memory_space<vmem>>, %arg8: memref<1xf32, #tpu.memory_space<smem>>, %arg9: memref<2x8xf32, #tpu.memory_space<vmem>>, %arg10: memref<2x32xf32, #tpu.memory_space<vmem>>) attributes {dimension_semantics = [#tpu.dimension_semantics<parallel>], iteration_bounds = array<i64: 1>, scalar_prefetch = 0 : i64, scratch_operands = 0 : i64, tpu.core_type = #tpu.core_type<tc>, window_params = [{transform_indices = @transform_0, window_bounds = array<i64: 2, 8, 32>}, {transform_indices = @transform_1, window_bounds = array<i64: 2, 32>}, {pipeline_mode = #tpu.pipeline_mode<synchronous>, transform_indices = @transform_2, window_bounds = array<i64: 32, 32>}, {pipeline_mode = #tpu.pipeline_mode<synchronous>, transform_indices = @transform_3, window_bounds = array<i64: 1, 32>}, {pipeline_mode = #tpu.pipeline_mode<synchronous>, transform_indices = @transform_4, window_bounds = array<i64: 32, 32>}, {pipeline_mode = #tpu.pipeline_mode<synchronous>, transform_indices = @transform_5, window_bounds = array<i64: 1, 32>}, {pipeline_mode = #tpu.pipeline_mode<synchronous>, transform_indices = @transform_6, window_bounds = array<i64: 1, 32>}, {transform_indices = @transform_7, window_bounds = array<i64: 1>}, {transform_indices = @transform_8, window_bounds = array<i64: 2, 8>}, {transform_indices = @transform_9, window_bounds = array<i64: 2, 32>}]} {
    %c0 = arith.constant 0 : index
    %c0_0 = arith.constant 0 : index
    %c0_1 = arith.constant 0 : index
    %0 = vector.load %arg1[%c0, %c0_0, %c0_1] : memref<2x8x32xf32, #tpu.memory_space<vmem>>, vector<2x8x32xf32>
    %c0_2 = arith.constant 0 : index
    %c0_3 = arith.constant 0 : index
    %1 = vector.load %arg2[%c0_2, %c0_3] : memref<2x32xf32, #tpu.memory_space<vmem>>, vector<2x32xf32>
    %2 = vector.shape_cast %0 : vector<2x8x32xf32> to vector<16x32xf32>
    %c0_4 = arith.constant 0 : index
    %c0_5 = arith.constant 0 : index
    %3 = vector.load %arg3[%c0_4, %c0_5] : memref<32x32xf32, #tpu.memory_space<vmem>>, vector<32x32xf32>
    %cst = arith.constant dense<0.000000e+00> : vector<16x32xf32>
    %4 = tpu.matmul %2, %3, %cst {dimension_numbers = #tpu.dot_dimension_numbers<[1], [0], [0], [1], [0, 0, 1, 1], [], []>} : vector<16x32xf32>, vector<32x32xf32>, vector<16x32xf32> -> vector<16x32xf32>
    %5 = vector.shape_cast %4 : vector<16x32xf32> to vector<2x8x32xf32>
    %c0_6 = arith.constant 0 : index
    %c0_7 = arith.constant 0 : index
    %6 = vector.load %arg4[%c0_6, %c0_7] : memref<1x32xf32, #tpu.memory_space<vmem>>, vector<1x32xf32>
    %7 = vector.shape_cast %6 : vector<1x32xf32> to vector<1x1x32xf32>
    %8 = vector.broadcast %7 : vector<1x1x32xf32> to vector<2x8x32xf32>
    %9 = arith.addf %5, %8 : vector<2x8x32xf32>
    %c0_8 = arith.constant 0 : index
    %c0_9 = arith.constant 0 : index
    %10 = vector.load %arg5[%c0_8, %c0_9] : memref<32x32xf32, #tpu.memory_space<vmem>>, vector<32x32xf32>
    %cst_10 = arith.constant dense<0.000000e+00> : vector<2x32xf32>
    %11 = tpu.matmul %1, %10, %cst_10 {dimension_numbers = #tpu.dot_dimension_numbers<[1], [0], [0], [1], [0, 0, 1, 1], [], []>} : vector<2x32xf32>, vector<32x32xf32>, vector<2x32xf32> -> vector<2x32xf32>
    %c0_11 = arith.constant 0 : index
    %c0_12 = arith.constant 0 : index
    %12 = vector.load %arg6[%c0_11, %c0_12] : memref<1x32xf32, #tpu.memory_space<vmem>>, vector<1x32xf32>
    %13 = vector.broadcast %12 : vector<1x32xf32> to vector<2x32xf32>
    %14 = arith.addf %11, %13 : vector<2x32xf32>
    %15 = vector.shape_cast %14 : vector<2x32xf32> to vector<2x1x32xf32>
    %16 = vector.broadcast %15 : vector<2x1x32xf32> to vector<2x8x32xf32>
    %17 = arith.addf %9, %16 : vector<2x8x32xf32>
    %18 = math.tanh %17 : vector<2x8x32xf32>
    %c0_13 = arith.constant 0 : index
    %c0_14 = arith.constant 0 : index
    %19 = vector.load %arg7[%c0_13, %c0_14] : memref<1x32xf32, #tpu.memory_space<vmem>>, vector<1x32xf32>
    %20 = vector.shape_cast %19 : vector<1x32xf32> to vector<1x1x32xf32>
    %21 = vector.broadcast %20 : vector<1x1x32xf32> to vector<2x8x32xf32>
    %22 = arith.mulf %18, %21 : vector<2x8x32xf32>
    %cst_15 = arith.constant dense<0.000000e+00> : vector<2x8xf32>
    %23 = vector.multi_reduction <add>, %22, %cst_15 [2] : vector<2x8x32xf32> to vector<2x8xf32>
    %c0_16 = arith.constant 0 : index
    %24 = memref.load %arg8[%c0_16] : memref<1xf32, #tpu.memory_space<smem>>
    %25 = vector.broadcast %24 : f32 to vector<2x8xf32>
    %26 = arith.addf %23, %25 : vector<2x8xf32>
    %cst_17 = arith.constant dense<0xFF800000> : vector<2xf32>
    %27 = vector.multi_reduction <maximumf>, %26, %cst_17 [1] : vector<2x8xf32> to vector<2xf32>
    %28 = vector.shape_cast %27 : vector<2xf32> to vector<2x1xf32>
    %29 = vector.broadcast %28 : vector<2x1xf32> to vector<2x8xf32>
    %30 = arith.subf %26, %29 : vector<2x8xf32>
    %31 = math.exp %30 : vector<2x8xf32>
    %cst_18 = arith.constant dense<0.000000e+00> : vector<2xf32>
    %32 = vector.multi_reduction <add>, %31, %cst_18 [1] : vector<2x8xf32> to vector<2xf32>
    %33 = vector.shape_cast %32 : vector<2xf32> to vector<2x1xf32>
    %34 = tpu.reciprocal %33 : vector<2x1xf32> -> vector<2x1xf32>
    %35 = vector.broadcast %34 : vector<2x1xf32> to vector<2x8xf32>
    %36 = arith.mulf %31, %35 : vector<2x8xf32>
    %c0_19 = arith.constant 0 : index
    %c0_20 = arith.constant 0 : index
    %37 = vector.load %arg9[%c0_19, %c0_20] : memref<2x8xf32, #tpu.memory_space<vmem>>, vector<2x8xf32>
    tpu.vector_store %arg9[%c0_19, %c0_20], %36 {strides = array<i32>} : memref<2x8xf32, #tpu.memory_space<vmem>>, vector<2x8xf32>,
    %38 = vector.shape_cast %36 : vector<2x8xf32> to vector<2x8x1xf32>
    %39 = vector.broadcast %38 : vector<2x8x1xf32> to vector<2x8x32xf32>
    %40 = arith.mulf %0, %39 : vector<2x8x32xf32>
    %cst_21 = arith.constant dense<0.000000e+00> : vector<2x32xf32>
    %41 = vector.multi_reduction <add>, %40, %cst_21 [1] : vector<2x8x32xf32> to vector<2x32xf32>
    %c0_22 = arith.constant 0 : index
    %c0_23 = arith.constant 0 : index
    %42 = vector.load %arg10[%c0_22, %c0_23] : memref<2x32xf32, #tpu.memory_space<vmem>>, vector<2x32xf32>
    tpu.vector_store %arg10[%c0_22, %c0_23], %41 {strides = array<i32>} : memref<2x32xf32, #tpu.memory_space<vmem>>, vector<2x32xf32>,
    return
  }
  func.func @transform_0(%arg0: i32) -> (i32, i32, i32) {
    %c0_i32 = arith.constant 0 : i32
    %c0_i32_0 = arith.constant 0 : i32
    %c0_i32_1 = arith.constant 0 : i32
    return %arg0, %c0_i32, %c0_i32_0 : i32, i32, i32
  }
  func.func @transform_1(%arg0: i32) -> (i32, i32) {
    %c0_i32 = arith.constant 0 : i32
    %c0_i32_0 = arith.constant 0 : i32
    return %arg0, %c0_i32 : i32, i32
  }
  func.func @transform_2(%arg0: i32) -> (i32, i32) {
    %c0_i32 = arith.constant 0 : i32
    %c0_i32_0 = arith.constant 0 : i32
    %c0_i32_1 = arith.constant 0 : i32
    return %c0_i32, %c0_i32_0 : i32, i32
  }
  func.func @transform_3(%arg0: i32) -> (i32, i32) {
    %c0_i32 = arith.constant 0 : i32
    %c0_i32_0 = arith.constant 0 : i32
    %c0_i32_1 = arith.constant 0 : i32
    return %c0_i32, %c0_i32_0 : i32, i32
  }
  func.func @transform_4(%arg0: i32) -> (i32, i32) {
    %c0_i32 = arith.constant 0 : i32
    %c0_i32_0 = arith.constant 0 : i32
    %c0_i32_1 = arith.constant 0 : i32
    return %c0_i32, %c0_i32_0 : i32, i32
  }
  func.func @transform_5(%arg0: i32) -> (i32, i32) {
    %c0_i32 = arith.constant 0 : i32
    %c0_i32_0 = arith.constant 0 : i32
    %c0_i32_1 = arith.constant 0 : i32
    return %c0_i32, %c0_i32_0 : i32, i32
  }
  func.func @transform_6(%arg0: i32) -> (i32, i32) {
    %c0_i32 = arith.constant 0 : i32
    %c0_i32_0 = arith.constant 0 : i32
    %c0_i32_1 = arith.constant 0 : i32
    return %c0_i32, %c0_i32_0 : i32, i32
  }
  func.func @transform_7(%arg0: i32) -> i32 {
    %c0_i32 = arith.constant 0 : i32
    %c0_i32_0 = arith.constant 0 : i32
    return %c0_i32 : i32
  }
  func.func @transform_8(%arg0: i32) -> (i32, i32) {
    %c0_i32 = arith.constant 0 : i32
    %c0_i32_0 = arith.constant 0 : i32
    return %arg0, %c0_i32 : i32, i32
  }
  func.func @transform_9(%arg0: i32) -> (i32, i32) {
    %c0_i32 = arith.constant 0 : i32
    %c0_i32_0 = arith.constant 0 : i32
    return %arg0, %c0_i32 : i32, i32
  }
}

</mosaic_0001>

<bundles_post_ra>
// kernel: tpu_custom_call.1
= control target key start
LH: loop header
LB: loop body
LE: loop exit
PB: predicated region body
PF: predicated region fallthrough
CT: control target
= control target key end

     0   :  { %16 = vsyncpa [#allocation4], 0  ;;  %s839_s0 = inlined_call_operand.hbm [shape: f32[2,8,32], index: 0, kind: input, shape index: {}]   ;;  %s840_s1 = inlined_call_operand.vmem [shape: f32[2,32], index: 1, kind: input, shape index: {}]   ;;  %s841_s2 = inlined_call_operand.hbm [shape: f32[32,32], index: 2, kind: input, shape index: {}]   ;;  %s842_s3 = inlined_call_operand.vmem [shape: f32[1,32], index: 3, kind: input, shape index: {}]   ;;  %s843_s4 = inlined_call_operand.hbm [shape: f32[32,32], index: 4, kind: input, shape index: {}]   ;;  %s844_s5 = inlined_call_operand.vmem [shape: f32[1,32], index: 5, kind: input, shape index: {}]   ;;  %s845_s6 = inlined_call_operand.vmem [shape: f32[1,32], index: 6, kind: input, shape index: {}]   ;;  %s846_s7 = inlined_call_operand.<no memory space> [shape: f32[1], index: 7, kind: input, shape index: {}]   ;;  %s847_s8 = inlined_call_operand.hbm [shape: f32[2,8], index: 8, kind: output, shape index: {0}]   ;;  %s848_s9 = inlined_call_operand.hbm [shape: f32[2,32], index: 9, kind: output, shape index: {1}]  }
   0x1   :  { %17 = vsyncpa [#allocation7], 0 }
   0x2   :  { %18 = vsyncpa [#allocation5], 0 }
   0x3   :  { %19 = vsyncpa [#allocation11], 0  ;;  %s652_s30 = smov [#allocation6]   ;;  %s653_s11 = smov [#allocation3]  }
   0x4   :  { %s39_s10 = sshll.u32 %s652_s30, 4  ;;  %s25_s12 = sshll.u32 %s653_s11, 4  ;;  %s40_s10 = int_to_ptr.vmem [resolvable:$true] %s39_s10  ;;  %s714_s12 = int_to_ptr.vmem [resolvable:$true] %s25_s12 }
   0x5   :  { %s534_s15 = scalar_lea.hbm %s841_s2, 512 }
   0x6   :  { %p535_p0 = scmp.ne.s32.totalorder %s841_s2, %s534_s15  ;;  %p538_p1 = scmp.lt.u32.totalorder %s534_s15, %s841_s2 }
   0x8   :  { %p540_p2 = pnand %p538_p1, %p535_p0 }
   0xa   :  { %543 = shalt.err (!%p540_p2)
}
   0xb   :  { %s544_s20 = scalar_lea.vmem %s40_s10, 512  ;;  %p549_p4 = scmp.lt.s32.totalorder %s40_s10, %s40_s10 }
   0xc   :  { %p545_p3 = scmp.ne.s32.totalorder %s40_s10, %s544_s20  ;;  %p550_p5 = scmp.lt.s32.totalorder %s544_s20, %s544_s20 }
   0xe   :  { %p551_p6 = por %p550_p5, %p549_p4 }
  0x10   :  { %p552_p7 = pnand %p551_p6, %p545_p3 }
  0x12   :  { %555 = shalt.err (!%p552_p7)
}
  0x13   :  { %s654_s21 = smov 128   ;;  %s655_s22 = smov 8  }
  0x14   :  { %45 = dma.hbm_to_vmem [thread:$0]  %s841_s2, 512, %s40_s10, [#allocation7], %s654_s21, %s654_s21, %s655_s22  }
  0x15   :  { %s556_s27 = scalar_lea.hbm %s839_s0, 256 }
  0x16   :  { %p557_p8 = scmp.ne.s32.totalorder %s839_s0, %s556_s27  ;;  %p560_p9 = scmp.lt.u32.totalorder %s556_s27, %s839_s0 }
  0x18   :  { %p562_p10 = pnand %p560_p9, %p557_p8 }
  0x1a   :  { %565 = shalt.err (!%p562_p10)
}
  0x1b   :  { %s566_s13 = scalar_lea.vmem %s714_s12, 256  ;;  %p571_p12 = scmp.lt.s32.totalorder %s714_s12, %s714_s12 }
  0x1c   :  { %p567_p11 = scmp.ne.s32.totalorder %s714_s12, %s566_s13  ;;  %p572_p13 = scmp.lt.s32.totalorder %s566_s13, %s566_s13 }
  0x1e   :  { %p573_p0 = por %p572_p13, %p571_p12 }
  0x20   :  { %p574_p1 = pnand %p573_p0, %p567_p11 }
  0x22   :  { %577 = shalt.err (!%p574_p1)
}
  0x23   :  { %31 = dma.hbm_to_vmem [thread:$0]  %s839_s0, 256, %s714_s12, [#allocation4], %s654_s21, %s654_s21, %s655_s22  }
  0x24   :  { %s656_s14 = smov [#allocation8]   ;;  %s578_s18 = scalar_lea.hbm %s843_s4, 512 }
  0x25   :  { %s53_s15 = sshll.u32 %s656_s14, 4  ;;  %p579_p2 = scmp.ne.s32.totalorder %s843_s4, %s578_s18  ;;  %s54_s15 = int_to_ptr.vmem [resolvable:$true] %s53_s15 }
  0x26   :  { %p582_p3 = scmp.lt.u32.totalorder %s578_s18, %s843_s4 }
  0x28   :  { %p584_p4 = pnand %p582_p3, %p579_p2 }
  0x2a   :  { %587 = shalt.err (!%p584_p4)
}
  0x2b   :  { %s588_s25 = scalar_lea.vmem %s54_s15, 512  ;;  %p593_p6 = scmp.lt.s32.totalorder %s54_s15, %s54_s15 }
  0x2c   :  { %p589_p5 = scmp.ne.s32.totalorder %s54_s15, %s588_s25  ;;  %p594_p7 = scmp.lt.s32.totalorder %s588_s25, %s588_s25 }
  0x2e   :  { %p595_p8 = por %p594_p7, %p593_p6 }
  0x30   :  { %p596_p9 = pnand %p595_p8, %p589_p5 }
  0x32   :  { %599 = shalt.err (!%p596_p9)
}
  0x33   :  { %59 = dma.hbm_to_vmem [thread:$0]  %s843_s4, 512, %s54_s15, [#allocation7], %s654_s21, %s654_s21, %s655_s22  }
  0x34   :  { %644 = dma.done.wait [#allocation4], 256  }
  0x35   :  { %645 = vsyncadd [#allocation4], 4294967040 }
  0x36   :  { %646 = dma.done.wait [#allocation7], 1024  }
  0x37   :  { %647 = vsyncadd [#allocation7], 4294966272  ;;  %v657_v0 = vmov 0.0|0.0   ;;  %vm658_vm0 = vmmov 0   ;;  %v659_v1 = vmov 0.0   ;;  %v173_v2 = vld [vmem:[#allocation8] sm:$0xff]  ;;  %v261_v19 = vlaneseq }
  0x38   :  { %504 = vmatprep.subr.bf16.mxu1 %v657_v0  ;;  %493 = vmatprep.mubr.msk.f32.mxu1 %vm658_vm0, %v659_v1  ;;  %v174_v3 = vld [vmem:[#allocation8 + $0x8] sm:$0xff]  ;;  %v78_v4 = vld [vmem:[#allocation6] sm:$0xff]  ;;  %v175_v7 = vld [vmem:[#allocation8 + $0x10] sm:$0xff]  ;;  %vm82_vm1 = vcmask 261120   ;;  %v660_v17 = vmov 1966171168   ;;  %v310_v49 = vstv %s846_s7 }
  0x39   :  { %v505_v5 = vpack.c.bf16 %v174_v3, %v173_v2  ;;  %v79_v6 = vld [vmem:[#allocation6 + $0x8] sm:$0xff]  ;;  %v176_v8 = vld [vmem:[#allocation8 + $0x18] sm:$0xff]  ;;  %v80_v10 = vld [vmem:[#allocation6 + $0x10] sm:$0xff]  ;;  %v259_v18 = vunpack.c.l.s4 %v660_v17  ;;  %v778_v21 = vshrl.u32 %v261_v19, 7  ;;  %v316_v48 = vand.u32 127, %v261_v19 }
  0x3a   :  { %v496_v9 = vpack.c.bf16 %v79_v6, %v78_v4  ;;  %v81_v11 = vld [vmem:[#allocation6 + $0x18] sm:$0xff]  ;;  %v508_v12 = vpack.c.bf16 %v176_v8, %v175_v7  ;;  %v766_v14 = vld [vmem:[#allocation3] sm:$0xff]  ;;  %vm325_vm2 = vcmask 1041409   ;;  %vm328_vm3 = vcmask 58368  }
  0x3b   :  { %506 = vmatpush3.bf16.msra.mxu1 %v505_v5  ;;  %v500_v13 = vpack.c.bf16 %v81_v11, %v80_v10  ;;  %482 = vmatprep.mubr.msk.f32.mxu0 %vm82_vm1, %v766_v14  ;;  %v77_v15 = vld [vmem:[%s840_s1] sm:$0x3]  ;;  %v773_v16 = vld [vmem:[#allocation3 + $0x8] sm:$0xff]  ;;  %v260_v20 = vunpack.c.0.s8 %v259_v18  ;;  %v788_v30 = vsub.s32 0, %v778_v21  ;;  %v319_v51 = vsub.s32 %v316_v48, %v778_v21 }
  0x3c   :  { %497 = vmatprep.subr.bf16.mxu0 %v496_v9  ;;  %507 = vmatprep.subr.bf16.mxu1 %v657_v0  ;;  %v460_v22 = vld [vmem:[%s844_s5] ss:$0 sm:$0xff]  ;;  %v661_v59 = vmov 0   ;;  %v339_v60 = vsub.s32 1, %v778_v21 }
  0x3d   :  { %499 = vmatpush3.bf16.msra.mxu0 %v496_v9  ;;  %v263_v23 = vsub.s32 %v260_v20, %v778_v21  ;;  %v459_v28 = vld [vmem:[%s842_s3] ss:$0 sm:$0xff]  ;;  %523 = vset.pattern.permute.xlu0 %v661_v59 }
  0x3e   :  { %501 = vmatprep.subr.bf16.mxu0 %v500_v13  ;;  %v462_v41 = vld [vmem:[%s845_s6] ss:$0 sm:$0xff]  ;;  %522 = vset.pattern.permute.xlu1 %v661_v59  ;;  %s662_s6 = smov [#allocation9]  }
  0x3f   :  { %509 = vmatpush3.bf16.msra.mxu1 %v508_v12  ;;  %s433_s7 = sshll.u32 %s662_s6, 4  ;;  %s434_s7 = int_to_ptr.vmem [resolvable:$true] %s433_s7 }
  0x40   :  { %s600_s30 = scalar_lea.vmem %s434_s7, 32  ;;  %p605_p11 = scmp.lt.s32.totalorder %s434_s7, %s434_s7 }
  0x41   :  { %503 = vmatpush3.bf16.msra.mxu0 %v500_v13  ;;  %p601_p10 = scmp.ne.s32.totalorder %s434_s7, %s600_s30  ;;  %p606_p12 = scmp.lt.s32.totalorder %s600_s30, %s600_s30 }
  0x42   :  { %494 = vmatmul.mubr.msk.f32.vlgmr.msra.gmra.mrb[0].mxu1 %vm82_vm1, %v77_v15 }
  0x43   :  { %p607_p13 = por %p606_p12, %p605_p11 }
  0x44   :  { %483 = vmatmul.mubr.msk.f32.vlgmr.msra.gmra.mrb[0].mxu0 %vm82_vm1, %v773_v16 }
  0x45   :  { %p608_p0 = pnand %p607_p13, %p601_p10 }
 0x115   :  { %v253_v24 = vpop.f32.mrb[0].mxu1 }
 0x116   :  { %v254_v25 = vadd.f32 %v460_v22, %v253_v24  ;;  %v495_v26 = vpop.f32.mrb[1].mxu1 }
 0x117   :  { %v484_v27 = vpop.f32.mrb[0].mxu0 }
 0x118   :  { %v264_v29 = vrot.slane %v254_v25, %v263_v23  ;;  %v155_v31 = vpop.f32.mrb[1].mxu0  ;;  %v172_v37 = vadd.f32 %v484_v27, %v459_v28 }
 0x119   :  { %v171_v34 = vadd.f32 %v459_v28, %v155_v31 }
 0x11a   :  { %v265_v32 = vcombine.high %v264_v29, %v264_v29  ;;  %v272_v33 = vrot.slane %v264_v29, %v263_v23 }
 0x11c   :  { %v279_v35 = vrot.slane %v265_v32, %v263_v23  ;;  %v283_v36 = vrot.slane %v272_v33, %v788_v30 }
 0x11e   :  { %v287_v38 = vrot.slane %v279_v35, %v788_v30  ;;  %v290_v39 = vadd.f32 %v283_v36, %v171_v34 }
 0x120   :  { %v291_v40 = vadd.f32 %v287_v38, %v172_v37  ;;  %524 = vtanh.f32 %v290_v39 }
 0x122   :  { %526 = vtanh.f32 %v291_v40 }
 0x12a   :  { %v525_v42 = vpop.eup %524 }
 0x12b   :  { %v301_v43 = vmul.f32 %v525_v42, %v462_v41 }
 0x12c   :  { %v527_v44 = vpop.eup %526 }
 0x12d   :  { %v303_v45 = vsel %vm82_vm1, %v301_v43, 0.0  ;;  %v302_v46 = vmul.f32 %v527_v44, %v462_v41 }
 0x12e   :  { %304 = vadd.xlane.f32.xlu0 %v303_v45 }
 0x12f   :  { %v306_v47 = vsel %vm82_vm1, %v302_v46, 0.0 }
 0x132   :  { %307 = vadd.xlane.f32.xlu0 %v306_v47 }
 0x1bb   :  { %v305_v50 = vpop.xlane.xlu0 %304 }
 0x1bc   :  { %v311_v52 = vadd.f32 %v310_v49, %v305_v50 }
 0x1be   :  { %v320_v55 = vrot.slane %v311_v52, %v319_v51 }
 0x1bf   :  { %v308_v53 = vpop.xlane.xlu0 %307 }
 0x1c0   :  { %v312_v54 = vadd.f32 %v310_v49, %v308_v53 }
 0x1c2   :  { %v324_v56 = vrot.slane %v312_v54, %v319_v51 }
 0x1c4   :  { %v326_v57 = vsel %vm325_vm2, %v324_v56, %v320_v55 }
 0x1c5   :  { %v329_v58 = vsel %vm328_vm3, %v326_v57, -inf }
 0x1c6   :  { %330 = vmax.xlane.f32.xlu1 %v329_v58 }
 0x253   :  { %v331_v61 = vpop.xlane.xlu1 %330 }
 0x254   :  { %v336_v62 = vrot.slane %v331_v61, %v788_v30  ;;  %v340_v63 = vrot.slane %v331_v61, %v339_v60 }
 0x256   :  { %v343_v0 = vsub.f32 %v311_v52, %v336_v62  ;;  %v344_v1 = vsub.f32 %v312_v54, %v340_v63 }
 0x258   :  { %v345_v2 = vmul.f32 1.442695, %v343_v0  ;;  %v347_v3 = vmul.f32 1.442695, %v344_v1 }
 0x25a   :  { %528 = vpow2.f32 %v345_v2 }
 0x25b   :  { %530 = vpow2.f32 %v347_v3 }
 0x264   :  { %v529_v4 = vpop.eup %528 }
 0x265   :  { %v531_v5 = vpop.eup %530  ;;  %352 = vperm.xlu1 %522, %v529_v4  }
 0x266   :  { %355 = vperm.xlu0 %523, %v531_v5  }
 0x2e4   :  { %v353_v6 = vpop.permute.xlu1 %352 }
 0x2e5   :  { %v356_v7 = vpop.permute.xlu0 %355  ;;  %v360_v8 = vrot.slane %v353_v6, %v319_v51 }
 0x2e6   :  { %v364_v9 = vrot.slane %v356_v7, %v319_v51 }
 0x2e8   :  { %v365_v10 = vsel %vm325_vm2, %v364_v9, %v360_v8 }
 0x2e9   :  { %v367_v11 = vsel %vm328_vm3, %v365_v10, 0.0 }
 0x2ea   :  { %368 = vadd.xlane.f32.xlu1 %v367_v11 }
 0x377   :  { %v369_v12 = vpop.xlane.xlu1 %368 }
 0x378   :  { %532 = vrcp.f32 %v369_v12 }
 0x382   :  { %v533_v13 = vpop.eup %532 }
 0x383   :  { %v375_v15 = vrot.slane %v533_v13, %v788_v30  ;;  %v379_v18 = vrot.slane %v533_v13, %v339_v60 }
 0x385   :  { %v382_v17 = vmul.f32 %v529_v4, %v375_v15  ;;  %v383_v19 = vmul.f32 %v531_v5, %v379_v18 }
 0x387   :  { %387 = vperm.xlu0 %523, %v382_v17  }
 0x38b   :  { %390 = vperm.xlu0 %523, %v383_v19  }
 0x406   :  { %v388_v20 = vpop.permute.xlu0 %387 }
 0x407   :  { %v405_v21 = vmul.f32 %v388_v20, %v766_v14  ;;  %v395_v25 = vrot.slane %v388_v20, %v319_v51 }
 0x409   :  { %v407_v22 = vsel %vm82_vm1, %v405_v21, 0.0 }
 0x40a   :  { %v408_v23 = vrot.slane %v407_v22, 4  ;;  %v391_v24 = vpop.permute.xlu0 %390 }
 0x40b   :  { %v399_v26 = vrot.slane %v391_v24, %v319_v51  ;;  %v406_v27 = vmul.f32 %v391_v24, %v773_v16 }
 0x40c   :  { %v409_v28 = vadd.f32 %v408_v23, %v407_v22 }
 0x40d   :  { %v414_v29 = vsel %vm82_vm1, %v406_v27, 0.0  ;;  %v400_v30 = vsel %vm325_vm2, %v399_v26, %v395_v25 }
 0x40e   :  { %v410_v31 = vrot.slane %v409_v28, 2  ;;  %v415_v32 = vrot.slane %v414_v29, 4  ;;  %402 = vst.msk [vmem:[#allocation9] sm:$0x3] %vm328_vm3, %v400_v30 }
 0x40f   :  { %611 = shalt.err (!%p608_p0)
}
 0x410   :  { %s612_s2 = scalar_lea.hbm %s847_s8, 32 }
 0x411   :  { %p613_p1 = scmp.ne.s32.totalorder %s847_s8, %s612_s2  ;;  %p616_p2 = scmp.lt.u32.totalorder %s612_s2, %s847_s8 }
 0x413   :  { %p618_p3 = pnand %p616_p2, %p613_p1 }
 0x415   :  { %621 = shalt.err (!%p618_p3)
}
 0x416   :  { %436 = dma.vmem_to_hbm [thread:$0]  %s434_s7, 32, %s847_s8, [#allocation5]   ;;  %v411_v14 = vadd.f32 %v410_v31, %v409_v28  ;;  %v416_v16 = vadd.f32 %v415_v32, %v414_v29  ;;  %vm425_vm4 = vcmask 254976  }
 0x417   :  { %s663_s19 = smov [#allocation10]  }
 0x418   :  { %v417_v33 = vrot.slane %v416_v16, 2  ;;  %v412_v34 = vrot.slane %v411_v14, 1  ;;  %s443_s20 = sshll.u32 %s663_s19, 4  ;;  %s444_s20 = int_to_ptr.vmem [resolvable:$true] %s443_s20 }
 0x419   :  { %s622_s23 = scalar_lea.vmem %s444_s20, 32  ;;  %p627_p5 = scmp.lt.s32.totalorder %s444_s20, %s444_s20 }
 0x41a   :  { %v418_v35 = vadd.f32 %v417_v33, %v416_v16  ;;  %v413_v38 = vadd.f32 %v412_v34, %v411_v14  ;;  %p623_p4 = scmp.ne.s32.totalorder %s444_s20, %s622_s23  ;;  %p628_p6 = scmp.lt.s32.totalorder %s622_s23, %s622_s23 }
 0x41c   :  { %v419_v36 = vrot.slane %v418_v35, 1  ;;  %p629_p7 = por %p628_p6, %p627_p5 }
 0x41e   :  { %v420_v37 = vadd.f32 %v419_v36, %v418_v35  ;;  %p630_p8 = pnand %p629_p7, %p623_p4 }
 0x420   :  { %v423_v39 = vsel %vm325_vm2, %v420_v37, %v413_v38 }
 0x421   :  { %426 = vst.msk [vmem:[#allocation10] sm:$0x3] %vm425_vm4, %v423_v39 }
 0x422   :  { %633 = shalt.err (!%p630_p8)
}
 0x423   :  { %s634_s25 = scalar_lea.hbm %s848_s9, 32 }
 0x424   :  { %p635_p9 = scmp.ne.s32.totalorder %s848_s9, %s634_s25  ;;  %p638_p10 = scmp.lt.u32.totalorder %s634_s25, %s848_s9 }
 0x426   :  { %p640_p11 = pnand %p638_p10, %p635_p9 }
 0x428   :  { %643 = shalt.err (!%p640_p11)
}
 0x429   :  { %446 = dma.vmem_to_hbm [thread:$0]  %s444_s20, 32, %s848_s9, [#allocation11]  }
 0x42a   :  { %648 = dma.done.wait [#allocation5], 32  }
 0x42b   :  { %649 = vsyncadd [#allocation5], 4294967264 }
 0x42c   :  { %650 = dma.done.wait [#allocation11], 32  }
 0x42d   :  { %651 = vsyncadd [#allocation11], 4294967264 }
 0x42e   :  { %453 = vsyncpa [#allocation4], 1 }
 0x42f   :  { %454 = vsyncpa [#allocation7], 1 }
 0x430   :  { %455 = vsyncpa [#allocation5], 1 }
 0x431   :  { %456 = vsyncpa [#allocation11], 1 }

</bundles_post_ra>
